<compile_context>
chip_gen: v7x
topology: tpu7x:2x2x1
jax: 0.10.0
libtpu: 0.0.40
codegen_flags: <defaults>
</compile_context>

<pallas_src>
import functools
import math

import jax
import jax.numpy as jnp
from jax import lax
from jax.experimental import pallas as pl
from jax.experimental.pallas import tpu as pltpu


def _round_up(a: int, b: int) -> int:
    return (a + b - 1) // b * b


def _cdiv(a: int, b: int) -> int:
    return (a + b - 1) // b


def _layer_norm_affine(y, p_ref, eps, inv_dim):
    """LayerNorm + affine on a (tm, N_pad) f32 tile.

    Invariant (by construction in the wrapper): columns >= dim of `y` are exactly 0
    because W's padded columns and the padded bias tail are zero, so the unmasked
    sums over N_pad equal the sums over the real `dim` columns.  gamma/beta padding
    is also zero, so padded output columns stay 0.
    """
    params = p_ref[...]                       # (3, N_pad) f32: [bias, gamma, beta]
    gamma = params[1:2, :]
    beta = params[2:3, :]
    s1 = jnp.sum(y, axis=-1, keepdims=True)
    s2 = jnp.sum(y * y, axis=-1, keepdims=True)
    mean = s1 * inv_dim
    var = jnp.maximum(s2 * inv_dim - mean * mean, 0.0)
    inv_std = lax.rsqrt(var + eps)            # rsqrt -> EUP slot
    return (y - mean) * (gamma * inv_std) + beta


def _proj_ln_kernel(x_ref, w_ref, p_ref, o_ref, *, eps, inv_dim):
    # Conv1D(kernel_size=1) hot path: native-dtype MXU matmul, f32 accumulation.
    y = jnp.dot(x_ref[...], w_ref[...], preferred_element_type=jnp.float32)
    y = y + p_ref[0:1, :]                     # Conv1D bias
    o_ref[...] = _layer_norm_affine(y, p_ref, eps, inv_dim).astype(o_ref.dtype)


def _proj_ln_ksplit_kernel(x_ref, w_ref, p_ref, o_ref, acc_ref, *, eps, inv_dim):
    # Large-weight path: K streamed in tiles; bias + LayerNorm only at the last K step.
    @pl.when(pl.program_id(1) == 0)
    def _():
        acc_ref[...] = jnp.zeros_like(acc_ref)

    acc_ref[...] += jnp.dot(x_ref[...], w_ref[...], preferred_element_type=jnp.float32)

    @pl.when(pl.program_id(1) == pl.num_programs(1) - 1)
    def _():
        y = acc_ref[...] + p_ref[0:1, :]
        o_ref[...] = _layer_norm_affine(y, p_ref, eps, inv_dim).astype(o_ref.dtype)


def projection_forward(x, w, b, gamma, beta, *, eps=1e-6, tm=512):
    """Fused Projection forward (pure, traceable; returns a lazy array).

    x: (B, L, in_dim); w: (in_dim, dim) == Conv1d weight[:, :, 0].T;
    b / gamma / beta: (dim,). Returns (B, L, dim) in x.dtype.
    """
    B, L, in_dim = x.shape
    dim = w.shape[1]
    M = B * L

    # TODO(synk): nn.Dropout with the module-default p=0.0 is an identity; no RNG emitted.

    compute_dtype = x.dtype
    out_dtype = x.dtype
    itemsize = jnp.dtype(compute_dtype).itemsize
    out_itemsize = jnp.dtype(out_dtype).itemsize
    sub = max(8, 32 // itemsize)              # sublane multiple: 8 (f32) / 16 (bf16)

    N_pad = _round_up(dim, 128)               # lane-dense output / weight columns

    # ---- static hardware query & VMEM budget --------------------------------
    try:
        vmem_cap = int(pltpu.get_tpu_info().vmem_capacity_bytes)
    except Exception:
        vmem_cap = 64 * 1024 * 1024           # conservative (v7x-sized) default
    budget = max(vmem_cap - (16 << 20), 24 << 20)

    have_buffered = hasattr(pl, "Buffered")   # static capability check (no runtime fallback)
    resident_bufs = 1 if have_buffered else 2

    # Resident weight vs. K-split decision.
    split_k = resident_bufs * in_dim * N_pad * itemsize > budget // 2
    if split_k:
        K_pad = _round_up(in_dim, 128)
        tk = 512 if K_pad % 512 == 0 else (256 if K_pad % 256 == 0 else 128)
    else:
        K_pad = in_dim                        # x / W blocks keep the full (maybe ragged) K
        tk = in_dim

    # ---- row tile: as large as fits, but >= 2 tiles so both v7x cores get work ----
    if M <= tm:
        tm_eff = _round_up(_cdiv(M, 2), sub) if M > sub else _round_up(max(M, sub), sub)
    else:
        tm_eff = _round_up(tm, sub)

    x_bufs = 2
    if have_buffered and not split_k and vmem_cap >= (96 << 20) and in_dim <= 256:
        x_bufs = 3                            # v5e/v6e: hide HBM latency on small-K shapes

    p_bytes = resident_bufs * 3 * N_pad * 4

    def footprint(tm_):
        f = x_bufs * tm_ * tk * itemsize                 # streamed x tiles
        f += 2 * tm_ * N_pad * out_itemsize              # streamed out tiles
        if split_k:
            f += 2 * tk * N_pad * itemsize               # streamed weight tiles
            f += tm_ * N_pad * 4                         # f32 accumulator scratch
        else:
            f += resident_bufs * K_pad * N_pad * itemsize  # resident weight
        f += p_bytes                                     # resident bias/gamma/beta
        f += 3 * tm_ * N_pad * 4                         # f32 y + epilogue temporaries
        return f

    while footprint(tm_eff) > budget and tm_eff > sub:
        tm_eff = max(sub, _round_up(tm_eff // 2, sub))

    vmem_limit = int(min(max(footprint(tm_eff) + (8 << 20), 32 << 20), vmem_cap - (2 << 20)))

    # ---- operand prep (no activation copies in the common path) --------------
    x2 = x.reshape(M, in_dim)                 # free reshape, no data movement
    M_rows = M
    if M < sub:                               # degenerate tiny-M corner only
        x2 = jnp.pad(x2, ((0, sub - M), (0, 0)))
        M_rows = sub
    if split_k and K_pad != in_dim:
        x2 = jnp.pad(x2, ((0, 0), (0, K_pad - in_dim)))
    grid_m = _cdiv(M_rows, tm_eff)

    # NOTE: hoist the weight cast/pad and param packing below to layer init when this
    # layer is called repeatedly; under the caller's jit they CSE / constant-fold.
    w_c = w.astype(compute_dtype)             # bf16 W for bf16 x -> single-pass MXU
    pad_k = (K_pad - in_dim) if split_k else 0
    pad_n = N_pad - dim
    if pad_k or pad_n:
        w_c = jnp.pad(w_c, ((0, pad_k), (0, pad_n)))
    # Packed (3, N_pad) f32 [bias; gamma; beta]; zero padding keeps padded y columns 0.
    params = jnp.stack(
        [
            jnp.pad(b.astype(jnp.float32), (0, pad_n)),
            jnp.pad(gamma.astype(jnp.float32), (0, pad_n)),
            jnp.pad(beta.astype(jnp.float32), (0, pad_n)),
        ],
        axis=0,
    )

    resident_kw = dict(pipeline_mode=pl.Buffered(1)) if have_buffered else {}
    stream_x_kw = (
        dict(pipeline_mode=pl.Buffered(x_bufs)) if (have_buffered and x_bufs != 2) else {}
    )

    if not split_k:
        kernel = functools.partial(_proj_ln_kernel, eps=float(eps), inv_dim=1.0 / float(dim))
        out = pl.pallas_call(
            kernel,
            out_shape=jax.ShapeDtypeStruct((M_rows, N_pad), out_dtype),
            grid_spec=pltpu.PrefetchScalarGridSpec(
                num_scalar_prefetch=0,
                grid=(grid_m,),
                in_specs=[
                    pl.BlockSpec((tm_eff, in_dim), lambda i: (i, 0), **stream_x_kw),   # x rows
                    pl.BlockSpec((in_dim, N_pad), lambda i: (0, 0), **resident_kw),    # weight
                    pl.BlockSpec((3, N_pad), lambda i: (0, 0), **resident_kw),         # b/gamma/beta
                ],
                out_specs=pl.BlockSpec((tm_eff, N_pad), lambda i: (i, 0)),
            ),
            compiler_params=pltpu.CompilerParams(
                dimension_semantics=("parallel",),
                vmem_limit_bytes=vmem_limit,
            ),
        )(x2, w_c, params)
    else:
        grid_k = K_pad // tk
        kernel = functools.partial(
            _proj_ln_ksplit_kernel, eps=float(eps), inv_dim=1.0 / float(dim)
        )
        out = pl.pallas_call(
            kernel,
            out_shape=jax.ShapeDtypeStruct((M_rows, N_pad), out_dtype),
            grid_spec=pltpu.PrefetchScalarGridSpec(
                num_scalar_prefetch=0,
                grid=(grid_m, grid_k),
                in_specs=[
                    pl.BlockSpec((tm_eff, tk), lambda i, k: (i, k)),                   # x K tile
                    pl.BlockSpec((tk, N_pad), lambda i, k: (k, 0)),                    # W K tile
                    pl.BlockSpec((3, N_pad), lambda i, k: (0, 0), **resident_kw),      # b/gamma/beta
                ],
                out_specs=pl.BlockSpec((tm_eff, N_pad), lambda i, k: (i, 0)),
                scratch_shapes=[pltpu.VMEM((tm_eff, N_pad), jnp.float32)],
            ),
            compiler_params=pltpu.CompilerParams(
                dimension_semantics=("parallel", "arbitrary"),
                vmem_limit_bytes=vmem_limit,
            ),
        )(x2, w_c, params)

    if M_rows != M or N_pad != dim:
        out = out[:M, :dim]
    return out.reshape(B, L, dim)


def reference_forward(x, w, b, gamma, beta, eps=1e-6):
    y = jnp.einsum("bld,de->ble", x.astype(jnp.float32), w.astype(jnp.float32)) + b.astype(
        jnp.float32
    )
    mean = jnp.mean(y, axis=-1, keepdims=True)
    var = jnp.mean((y - mean) ** 2, axis=-1, keepdims=True)
    return ((y - mean) / jnp.sqrt(var + eps)) * gamma + beta


if __name__ == "__main__":
    key = jax.random.PRNGKey(0)
    k1, k2, k3, k4 = jax.random.split(key, 4)

    proj = jax.jit(projection_forward)

    # Test 1: small, lane-unaligned dims (exercises N padding + masked-column-free LN).
    B, L, in_dim, dim = 2, 8, 32, 32
    x = jax.random.normal(k1, (B, L, in_dim), dtype=jnp.float32)
    bound = 1.0 / math.sqrt(in_dim)
    w = jax.random.uniform(k2, (in_dim, dim), minval=-bound, maxval=bound, dtype=jnp.float32)
    b = jax.random.uniform(k3, (dim,), minval=-bound, maxval=bound, dtype=jnp.float32)
    gamma = jnp.ones((dim,), dtype=jnp.float32)
    beta = jnp.zeros((dim,), dtype=jnp.float32)

    out = jax.block_until_ready(proj(x, w, b, gamma, beta))
    ref = reference_forward(x, w, b, gamma, beta)
    assert out.shape == (B, L, dim)
    assert jnp.allclose(out, ref, atol=2e-4, rtol=2e-4), "mismatch vs reference (test 1)"

    # Test 2: ragged M (grid_m > 1 with a partial last row tile), non-trivial gamma/beta.
    B2, L2, in2, d2 = 2, 300, 64, 96
    x2 = jax.random.normal(k4, (B2, L2, in2), dtype=jnp.float32)
    w2 = jax.random.uniform(k2, (in2, d2), minval=-0.1, maxval=0.1, dtype=jnp.float32)
    b2 = jax.random.uniform(k3, (d2,), minval=-0.1, maxval=0.1, dtype=jnp.float32)
    g2 = 1.0 + 0.1 * jax.random.normal(k1, (d2,), dtype=jnp.float32)
    bb2 = 0.1 * jax.random.normal(k4, (d2,), dtype=jnp.float32)

    out2 = jax.block_until_ready(proj(x2, w2, b2, g2, bb2))
    ref2 = reference_forward(x2, w2, b2, g2, bb2)
    assert out2.shape == (B2, L2, d2)
    assert jnp.allclose(out2, ref2, atol=2e-4, rtol=2e-4), "mismatch vs reference (test 2)"

    print("KERNEL_OK")
</pallas_src>

<mosaic_0001>
module attributes {stable_mosaic.version = 11 : i64} {
  func.func @_proj_ln_kernel(%arg0: i32, %arg1: memref<8x32xf32, #tpu.memory_space<vmem>>, %arg2: memref<32x128xf32, #tpu.memory_space<vmem>>, %arg3: memref<3x128xf32, #tpu.memory_space<vmem>>, %arg4: memref<8x128xf32, #tpu.memory_space<vmem>>) attributes {dimension_semantics = [#tpu.dimension_semantics<parallel>], iteration_bounds = array<i64: 2>, scalar_prefetch = 0 : i64, scratch_operands = 0 : i64, tpu.core_type = #tpu.core_type<tc>, window_params = [{transform_indices = @transform_0, window_bounds = array<i64: 8, 32>}, {pipeline_mode = #tpu.pipeline_mode<synchronous>, transform_indices = @transform_1, window_bounds = array<i64: 32, 128>}, {pipeline_mode = #tpu.pipeline_mode<synchronous>, transform_indices = @transform_2, window_bounds = array<i64: 3, 128>}, {transform_indices = @transform_3, window_bounds = array<i64: 8, 128>}]} {
    %c0 = arith.constant 0 : index
    %c0_0 = arith.constant 0 : index
    %0 = vector.load %arg1[%c0, %c0_0] : memref<8x32xf32, #tpu.memory_space<vmem>>, vector<8x32xf32>
    %c0_1 = arith.constant 0 : index
    %c0_2 = arith.constant 0 : index
    %1 = vector.load %arg2[%c0_1, %c0_2] : memref<32x128xf32, #tpu.memory_space<vmem>>, vector<32x128xf32>
    %cst = arith.constant dense<0.000000e+00> : vector<8x128xf32>
    %2 = tpu.matmul %0, %1, %cst {dimension_numbers = #tpu.dot_dimension_numbers<[1], [0], [0], [1], [0, 0, 1, 1], [], []>} : vector<8x32xf32>, vector<32x128xf32>, vector<8x128xf32> -> vector<8x128xf32>
    %c0_3 = arith.constant 0 : index
    %c0_4 = arith.constant 0 : index
    %3 = vector.load %arg3[%c0_3, %c0_4] : memref<3x128xf32, #tpu.memory_space<vmem>>, vector<1x128xf32>
    %4 = vector.broadcast %3 : vector<1x128xf32> to vector<8x128xf32>
    %5 = arith.addf %2, %4 : vector<8x128xf32>
    %c0_5 = arith.constant 0 : index
    %c0_6 = arith.constant 0 : index
    %6 = vector.load %arg3[%c0_5, %c0_6] : memref<3x128xf32, #tpu.memory_space<vmem>>, vector<3x128xf32>
    %7 = vector.extract_strided_slice %6 {offsets = [1, 0], sizes = [1, 128], strides = [1, 1]} : vector<3x128xf32> to vector<1x128xf32>
    %8 = vector.extract_strided_slice %6 {offsets = [2, 0], sizes = [1, 128], strides = [1, 1]} : vector<3x128xf32> to vector<1x128xf32>
    %cst_7 = arith.constant dense<0.000000e+00> : vector<8xf32>
    %9 = vector.multi_reduction <add>, %5, %cst_7 [1] : vector<8x128xf32> to vector<8xf32>
    %10 = vector.shape_cast %9 : vector<8xf32> to vector<8x1xf32>
    %11 = arith.mulf %5, %5 : vector<8x128xf32>
    %cst_8 = arith.constant dense<0.000000e+00> : vector<8xf32>
    %12 = vector.multi_reduction <add>, %11, %cst_8 [1] : vector<8x128xf32> to vector<8xf32>
    %13 = vector.shape_cast %12 : vector<8xf32> to vector<8x1xf32>
    %cst_9 = arith.constant 3.125000e-02 : f32
    %14 = vector.broadcast %cst_9 : f32 to vector<8x1xf32>
    %15 = arith.mulf %10, %14 : vector<8x1xf32>
    %cst_10 = arith.constant 3.125000e-02 : f32
    %16 = vector.broadcast %cst_10 : f32 to vector<8x1xf32>
    %17 = arith.mulf %13, %16 : vector<8x1xf32>
    %18 = arith.mulf %15, %15 : vector<8x1xf32>
    %19 = arith.subf %17, %18 : vector<8x1xf32>
    %cst_11 = arith.constant 0.000000e+00 : f32
    %20 = vector.broadcast %cst_11 : f32 to vector<8x1xf32>
    %21 = arith.maximumf %19, %20 : vector<8x1xf32>
    %cst_12 = arith.constant 9.99999997E-7 : f32
    %22 = vector.broadcast %cst_12 : f32 to vector<8x1xf32>
    %23 = arith.addf %21, %22 : vector<8x1xf32>
    %24 = math.rsqrt %23 : vector<8x1xf32>
    %25 = vector.broadcast %15 : vector<8x1xf32> to vector<8x128xf32>
    %26 = arith.subf %5, %25 : vector<8x128xf32>
    %27 = vector.broadcast %7 : vector<1x128xf32> to vector<8x128xf32>
    %28 = vector.broadcast %24 : vector<8x1xf32> to vector<8x128xf32>
    %29 = arith.mulf %27, %28 : vector<8x128xf32>
    %30 = arith.mulf %26, %29 : vector<8x128xf32>
    %31 = vector.broadcast %8 : vector<1x128xf32> to vector<8x128xf32>
    %32 = arith.addf %30, %31 : vector<8x128xf32>
    %c0_13 = arith.constant 0 : index
    %c0_14 = arith.constant 0 : index
    %33 = vector.load %arg4[%c0_13, %c0_14] : memref<8x128xf32, #tpu.memory_space<vmem>>, vector<8x128xf32>
    tpu.vector_store %arg4[%c0_13, %c0_14], %32 {strides = array<i32>} : memref<8x128xf32, #tpu.memory_space<vmem>>, vector<8x128xf32>,
    return
  }
  func.func @transform_0(%arg0: i32) -> (i32, i32) {
    %c0_i32 = arith.constant 0 : i32
    %c0_i32_0 = arith.constant 0 : i32
    return %arg0, %c0_i32 : i32, i32
  }
  func.func @transform_1(%arg0: i32) -> (i32, i32) {
    %c0_i32 = arith.constant 0 : i32
    %c0_i32_0 = arith.constant 0 : i32
    %c0_i32_1 = arith.constant 0 : i32
    return %c0_i32, %c0_i32_0 : i32, i32
  }
  func.func @transform_2(%arg0: i32) -> (i32, i32) {
    %c0_i32 = arith.constant 0 : i32
    %c0_i32_0 = arith.constant 0 : i32
    %c0_i32_1 = arith.constant 0 : i32
    return %c0_i32, %c0_i32_0 : i32, i32
  }
  func.func @transform_3(%arg0: i32) -> (i32, i32) {
    %c0_i32 = arith.constant 0 : i32
    %c0_i32_0 = arith.constant 0 : i32
    return %arg0, %c0_i32 : i32, i32
  }
}

</mosaic_0001>

<bundles_post_ra>
// kernel: projection_forward.1
= control target key start
LH: loop header
LB: loop body
LE: loop exit
PB: predicated region body
PF: predicated region fallthrough
CT: control target
= control target key end

     0   :  { %s406_s12 = smov 0   ;;  %s448_s0 = inlined_call_operand.vmem [shape: f32[16,32], index: 0, kind: input, shape index: {}]   ;;  %s449_s1 = inlined_call_operand.vmem [shape: f32[32,128], index: 1, kind: input, shape index: {}]   ;;  %s450_s2 = inlined_call_operand.vmem [shape: f32[3,128], index: 2, kind: input, shape index: {}]   ;;  %s451_s3 = inlined_call_operand.vmem [shape: f32[16,128], index: 3, kind: output, shape index: {}]  }
   0x1 LB: > { %s329_s13 = sadd.s32 4294967295, %s381_s12   ;;  %p333_p0 = scmp.ge.s32.totalorder %s381_s12, 1  ;;  %s381_s12 = sphi %s406_s12, %s13_s12  }
   0x2   : > { %p136_p1 = scmp.lt.s32.totalorder %s381_s12, 3 }
   0x4   : > { %p137_p2 = pnand %p333_p0, %p136_p1 }
   0x5   : > { %v167_v0 = vld [vmem:[%s449_s1] sm:$0xff] (!%p137_p2)  ;;  %v168_v1 = vld [vmem:[%s449_s1 + $0x8] sm:$0xff] (!%p137_p2)  ;;  %v169_v2 = vld [vmem:[%s449_s1 + $0x10] sm:$0xff] (!%p137_p2)  ;;  %v383_v3 = vmov (!%p137_p2), 0.0|0.0   ;;  %vm384_vm0 = vmmov (!%p137_p2), 0   ;;  %v385_v6 = vmov (!%p137_p2), 0.0   ;;  %v264_v20 = vlaneseq (!%p137_p2) }
   0x6   : > { %140 = sbr.rel (%p137_p2) target bundleno = 403 (0x193), region = 32  ;;  %356 = vmatprep.subr.bf16.mxu0 (!%p137_p2), %v383_v3  ;;  %v357_v4 = vpack.c.bf16 (!%p137_p2), %v168_v1, %v167_v0  ;;  %v170_v5 = vld [vmem:[%s449_s1 + $0x18] sm:$0xff] (!%p137_p2)  ;;  %353 = vmatprep.mubr.msk.f32.mxu0 (!%p137_p2), %vm384_vm0, %v385_v6  ;;  %p158_p3 = scmp.lt.s32.totalorder (!%p137_p2), %s329_s13, 1  ;;  %vm176_vm1 = vcmask (!%p137_p2), 261120   ;;  %v336_v9 = vld [vmem:[%s450_s2] ss:$0 sm:$0xff] (!%p137_p2) }
   0x7   : > { %v360_v7 = vpack.c.bf16 (!%p137_p2), %v170_v5, %v169_v2  ;;  %v265_v23 = vshrl.u32 (!%p137_p2), %v264_v20, 7  ;;  %v250_v25 = vld [vmem:[%s450_s2] sm:$0x7] (!%p137_p2) }
   0x8   : > { %358 = vmatpush3.bf16.msra.mxu0 (!%p137_p2), %v357_v4 }
   0x9   : > { %359 = vmatprep.subr.bf16.mxu0 (!%p137_p2), %v383_v3  ;;  %v266_v24 = vsub.s32 (!%p137_p2), 1, %v265_v23  ;;  %v272_v27 = vsub.s32 (!%p137_p2), 2, %v265_v23 }
   0xb   : > { %v267_v26 = vrot.slane (!%p137_p2), %v250_v25, %v266_v24  ;;  %v273_v30 = vrot.slane (!%p137_p2), %v250_v25, %v272_v27 }
   0xc   : > { %361 = vmatpush3.bf16.msra.mxu0 (!%p137_p2), %v360_v7 }
   0xd   : > { %s453_s13 = smov (!%p158_p3, %s329_s13), 1 }
   0xe   : > { %s334_s22 = sshll.u32 %s453_s13, 3 }
   0xf   : > { %s161_s25 = scalar_lea.vmem %s448_s0, %s334_s22  ;;  %s165_s5 = scalar_lea.vmem %s451_s3, %s334_s22 }
  0x10   : > { %v166_v8 = vld [vmem:[%s161_s25] sm:$0xff] }
  0x11   : > { %354 = vmatmul.mubr.msk.f32.vlgmr.msra.gmra.mrb[0].mxu0 %vm176_vm1, %v166_v8 }
  0xe4   : > { %v246_v10 = vpop.f32.mrb[0].mxu0 }
  0xe5   : > { %v247_v11 = vadd.f32 %v336_v9, %v246_v10  ;;  %v355_v12 = vpop.f32.mrb[1].mxu0 }
  0xe7   : > { %251 = vadd.xlane.f32.xlu0 %v247_v11  ;;  %v253_v13 = vmul.f32 %v247_v11, %v247_v11 }
  0xeb   : > { %254 = vadd.xlane.f32.xlu0 %v253_v13 }
 0x174   : > { %v252_v14 = vpop.xlane.xlu0 %251 }
 0x175   : > { %v256_v15 = vmul.f32 0.03125, %v252_v14 }
 0x177   : > { %v258_v17 = vmul.f32 %v256_v15, %v256_v15  ;;  %v263_v29 = vsub.f32 %v247_v11, %v256_v15 }
 0x178   : > { %v255_v16 = vpop.xlane.xlu0 %254 }
 0x179   : > { %v257_v18 = vmul.f32 0.03125, %v255_v16 }
 0x17b   : > { %v259_v19 = vsub.f32 %v257_v18, %v258_v17 }
 0x17d   : > { %v260_v21 = vmax.f32 %v259_v19, 0.0 }
 0x17f   : > { %v261_v22 = vadd.f32 1e-06, %v260_v21 }
 0x181   : > { %373 = vrsqrt.f32 %v261_v22 }
 0x18b   : > { %v374_v28 = vpop.eup %373 }
 0x18c   : > { %v268_v31 = vmul.f32 %v374_v28, %v267_v26 }
 0x18e   : > { %v269_v32 = vmul.f32 %v268_v31, %v263_v29 }
 0x190   : > { %v274_v33 = vadd.f32 %v273_v30, %v269_v32 }
 0x192   : > { %275 = vst [vmem:[%s165_s5] sm:$0xff] %v274_v33 }
 0x193 PF: > { %s13_s12 = sadd.s32 1, %s381_s12  }
 0x194   : > { %p10_p4 = scmp.ge.s32.totalorder %s13_s12, 4  }
 0x196   :  { %12 = sbr.rel (!%p10_p4) target bundleno = 1 (0x1), region = 62 }

</bundles_post_ra>
